<compile_context>
chip_gen: v6e
topology: v6e:2x2x1
jax: 0.10.0
libtpu: 0.0.40
codegen_flags: <defaults>
</compile_context>

<pallas_src>
import functools

import jax
import jax.numpy as jnp
from jax.experimental import pallas as pl
from jax.experimental.pallas import tpu as pltpu


def _layernorm_kernel(x_ref, w_ref, b_ref, o_ref, *, eps, out_compute_dtype):
    """One (tm, H) row tile; mean/variance over the hidden (lane) axis.

    The input tile is re-read for each pass (instead of binding a single
    full-tile f32 upcast) so the compiler is free to re-materialize the upcast
    per vreg rather than keep a persistent f32 copy of the tile alive across
    the cross-lane reductions.
    """
    # Pass 1: row mean (f32 accumulate).
    u = jnp.mean(x_ref[...].astype(jnp.float32), axis=-1, keepdims=True)
    # Pass 2: biased variance — exactly the PyTorch module's math.
    xc = x_ref[...].astype(jnp.float32) - u
    s = jnp.mean(xc * xc, axis=-1, keepdims=True)
    inv = jax.lax.rsqrt(s + eps)  # EUP slot: effectively free
    # Pass 3: normalize + scale/shift. Epilogue in bf16 on v6e/v7x when the
    # I/O dtype is bf16 (halves epilogue vreg/store bytes), else in f32.
    x_hat = (x_ref[...].astype(jnp.float32) - u) * inv
    w = w_ref[...].astype(out_compute_dtype)
    b = b_ref[...].astype(out_compute_dtype)
    y = w * x_hat.astype(out_compute_dtype) + b
    o_ref[...] = y.astype(o_ref.dtype)


def _round_up(x, m):
    return ((x + m - 1) // m) * m


def _has_bf16_vpu():
    """bf16 VALU exists on v6e and later; v2–v5 must keep the f32 epilogue."""
    try:
        kind = jax.devices()[0].device_kind.lower()
    except Exception:
        return False
    return not any(tag in kind for tag in ("v2", "v3", "v4", "v5"))


_WORKING_SET_BYTES = 8 << 20  # ~HBM-roofline knee; fits every generation's VMEM


def _choose_row_tile(rows, hidden, dtype):
    """Largest sublane-packed row tile whose pipeline working set stays ~8 MiB."""
    itemsize = jnp.dtype(dtype).itemsize
    # Sublane packing: 8 rows for f32, 16 for bf16, 32 for int8/fp8 — keeps
    # vregs fully packed and stores unmasked along the sublane axis.
    sublane = max(8, 32 // max(itemsize, 1))

    # Live bytes per tile row: double-buffered input + output in the native
    # dtype plus ~2 streamed f32 intermediates from the upcast/normalize chain.
    bytes_per_row = hidden * (2 * 2 * itemsize + 2 * 4)

    tm = _WORKING_SET_BYTES // max(bytes_per_row, 1)
    # Past ~512-1024 rows the HBM roofline is saturated; larger tiles only add
    # spill traffic, longer pipeline fill/drain and VMEM-overcommit risk.
    tm = min(tm, 1024)
    tm = max((tm // sublane) * sublane, sublane)
    # Never allocate a tile taller than the (sublane-rounded) row count.
    tm = min(tm, _round_up(rows, sublane))

    # Prefer an even number of grid steps so the "parallel" row axis splits
    # evenly across v7x's two TensorCores (no-op on single-TC v5e/v6e).
    grid = pl.cdiv(rows, tm)
    if grid > 1 and grid % 2 == 1:
        tm_even = _round_up(pl.cdiv(rows, grid + 1), sublane)
        if sublane <= tm_even <= tm and pl.cdiv(rows, tm_even) % 2 == 0:
            tm = tm_even
    return int(tm)


def _vmem_limit_bytes(tm, hidden, dtype):
    """Scoped-VMEM request from the actual tile footprint (not physical/2)."""
    itemsize = jnp.dtype(dtype).itemsize
    tile_io = 2 * 2 * tm * hidden * itemsize  # double-buffered input + output
    f32_tmp = 2 * tm * hidden * 4             # streamed f32 intermediates
    params = 2 * 2 * hidden * 4               # weight + bias (double-buffered)
    limit = tile_io + f32_tmp + params + (4 << 20)  # headroom for Mosaic scratch
    # Clamp to [16 MiB, 64 MiB]: never exceed v7x's 64 MiB per-TensorCore VMEM,
    # never request less than the smallest default scoped limit.
    return int(min(max(limit, 16 << 20), 64 << 20))


def bert_layer_norm(x, weight, bias, eps=1e-12, row_tile=None):
    """x: (..., hidden); weight, bias: (hidden,). Matches BertLayerNorm.forward."""
    orig_shape = x.shape
    hidden = orig_shape[-1]
    rows = 1
    for d in orig_shape[:-1]:
        rows *= d

    x2 = x.reshape(rows, hidden)          # metadata-only reshape, no HBM traffic
    w2 = weight.reshape(1, hidden)
    b2 = bias.reshape(1, hidden)

    tm = row_tile if row_tile is not None else _choose_row_tile(rows, hidden, x.dtype)
    grid_rows = pl.cdiv(rows, tm)         # no padding: ragged last tile is masked

    out_compute_dtype = (
        jnp.bfloat16
        if (x.dtype == jnp.bfloat16 and _has_bf16_vpu())
        else jnp.float32
    )
    kernel = functools.partial(
        _layernorm_kernel, eps=float(eps), out_compute_dtype=out_compute_dtype
    )

    out = pl.pallas_call(
        kernel,
        out_shape=jax.ShapeDtypeStruct((rows, hidden), x.dtype),
        grid_spec=pltpu.PrefetchScalarGridSpec(
            num_scalar_prefetch=0,
            grid=(grid_rows,),
            in_specs=[
                pl.BlockSpec((tm, hidden), lambda i: (i, 0)),
                pl.BlockSpec((1, hidden), lambda i: (0, 0)),  # weight: DMA'd once
                pl.BlockSpec((1, hidden), lambda i: (0, 0)),  # bias: DMA'd once
            ],
            out_specs=pl.BlockSpec((tm, hidden), lambda i: (i, 0)),
        ),
        compiler_params=pltpu.CompilerParams(
            dimension_semantics=("parallel",),
            vmem_limit_bytes=_vmem_limit_bytes(tm, hidden, x.dtype),
        ),
    )(x2, w2, b2)

    return out.reshape(orig_shape)


if __name__ == "__main__":
    key = jax.random.PRNGKey(0)
    k0, k1 = jax.random.split(key)
    batch, seq, hidden = 2, 8, 32

    x = jax.random.normal(k0, (batch, seq, hidden), dtype=jnp.float32)
    # Deterministic parameter init matching nn.Parameter(ones)/(zeros).
    weight = jnp.ones((hidden,), dtype=jnp.float32)
    bias = jnp.zeros((hidden,), dtype=jnp.float32)

    def ref_ln(x, w, b, eps=1e-12):
        u = jnp.mean(x, axis=-1, keepdims=True)
        s = jnp.mean((x - u) ** 2, axis=-1, keepdims=True)
        return w * ((x - u) / jnp.sqrt(s + eps)) + b

    y = bert_layer_norm(x, weight, bias, eps=1e-12)
    y = jax.block_until_ready(y)
    assert jnp.allclose(y, ref_ln(x, weight, bias), atol=1e-5, rtol=1e-5), \
        "mismatch vs reference"

    # Exercise the ragged-last-tile path (rows % tile != 0): no wrapper-side
    # pad/slice — Pallas masks the edge block's writeback.
    x_r = jax.random.normal(k1, (2, 9, hidden), dtype=jnp.float32)  # 18 rows
    y_r = jax.block_until_ready(
        bert_layer_norm(x_r, weight, bias, eps=1e-12, row_tile=8)
    )
    assert jnp.allclose(y_r, ref_ln(x_r, weight, bias), atol=1e-5, rtol=1e-5), \
        "mismatch vs reference (ragged rows)"

    print("KERNEL_OK")
</pallas_src>

<mosaic_0001>
module attributes {stable_mosaic.version = 11 : i64} {
  func.func @_layernorm_kernel(%arg0: i32, %arg1: memref<16x32xf32, #tpu.memory_space<vmem>>, %arg2: memref<1x32xf32, #tpu.memory_space<vmem>>, %arg3: memref<1x32xf32, #tpu.memory_space<vmem>>, %arg4: memref<16x32xf32, #tpu.memory_space<vmem>>) attributes {dimension_semantics = [#tpu.dimension_semantics<parallel>], iteration_bounds = array<i64: 1>, scalar_prefetch = 0 : i64, scratch_operands = 0 : i64, tpu.core_type = #tpu.core_type<tc>, window_params = [{transform_indices = @transform_0, window_bounds = array<i64: 16, 32>}, {pipeline_mode = #tpu.pipeline_mode<synchronous>, transform_indices = @transform_1, window_bounds = array<i64: 1, 32>}, {pipeline_mode = #tpu.pipeline_mode<synchronous>, transform_indices = @transform_2, window_bounds = array<i64: 1, 32>}, {transform_indices = @transform_3, window_bounds = array<i64: 16, 32>}]} {
    %c0 = arith.constant 0 : index
    %c0_0 = arith.constant 0 : index
    %0 = vector.load %arg1[%c0, %c0_0] : memref<16x32xf32, #tpu.memory_space<vmem>>, vector<16x32xf32>
    %cst = arith.constant dense<0.000000e+00> : vector<16xf32>
    %1 = vector.multi_reduction <add>, %0, %cst [1] : vector<16x32xf32> to vector<16xf32>
    %2 = vector.shape_cast %1 : vector<16xf32> to vector<16x1xf32>
    %cst_1 = arith.constant 3.200000e+01 : f32
    %3 = vector.broadcast %cst_1 : f32 to vector<16x1xf32>
    %4 = arith.divf %2, %3 : vector<16x1xf32>
    %c0_2 = arith.constant 0 : index
    %c0_3 = arith.constant 0 : index
    %5 = vector.load %arg1[%c0_2, %c0_3] : memref<16x32xf32, #tpu.memory_space<vmem>>, vector<16x32xf32>
    %6 = vector.broadcast %4 : vector<16x1xf32> to vector<16x32xf32>
    %7 = arith.subf %5, %6 : vector<16x32xf32>
    %8 = arith.mulf %7, %7 : vector<16x32xf32>
    %cst_4 = arith.constant dense<0.000000e+00> : vector<16xf32>
    %9 = vector.multi_reduction <add>, %8, %cst_4 [1] : vector<16x32xf32> to vector<16xf32>
    %10 = vector.shape_cast %9 : vector<16xf32> to vector<16x1xf32>
    %cst_5 = arith.constant 3.200000e+01 : f32
    %11 = vector.broadcast %cst_5 : f32 to vector<16x1xf32>
    %12 = arith.divf %10, %11 : vector<16x1xf32>
    %cst_6 = arith.constant 9.99999996E-13 : f32
    %13 = vector.broadcast %cst_6 : f32 to vector<16x1xf32>
    %14 = arith.addf %12, %13 : vector<16x1xf32>
    %15 = math.rsqrt %14 : vector<16x1xf32>
    %c0_7 = arith.constant 0 : index
    %c0_8 = arith.constant 0 : index
    %16 = vector.load %arg1[%c0_7, %c0_8] : memref<16x32xf32, #tpu.memory_space<vmem>>, vector<16x32xf32>
    %17 = vector.broadcast %4 : vector<16x1xf32> to vector<16x32xf32>
    %18 = arith.subf %16, %17 : vector<16x32xf32>
    %19 = vector.broadcast %15 : vector<16x1xf32> to vector<16x32xf32>
    %20 = arith.mulf %18, %19 : vector<16x32xf32>
    %c0_9 = arith.constant 0 : index
    %c0_10 = arith.constant 0 : index
    %21 = vector.load %arg2[%c0_9, %c0_10] : memref<1x32xf32, #tpu.memory_space<vmem>>, vector<1x32xf32>
    %c0_11 = arith.constant 0 : index
    %c0_12 = arith.constant 0 : index
    %22 = vector.load %arg3[%c0_11, %c0_12] : memref<1x32xf32, #tpu.memory_space<vmem>>, vector<1x32xf32>
    %23 = vector.broadcast %21 : vector<1x32xf32> to vector<16x32xf32>
    %24 = arith.mulf %23, %20 : vector<16x32xf32>
    %25 = vector.broadcast %22 : vector<1x32xf32> to vector<16x32xf32>
    %26 = arith.addf %24, %25 : vector<16x32xf32>
    %c0_13 = arith.constant 0 : index
    %c0_14 = arith.constant 0 : index
    %27 = vector.load %arg4[%c0_13, %c0_14] : memref<16x32xf32, #tpu.memory_space<vmem>>, vector<16x32xf32>
    tpu.vector_store %arg4[%c0_13, %c0_14], %26 {strides = array<i32>} : memref<16x32xf32, #tpu.memory_space<vmem>>, vector<16x32xf32>,
    return
  }
  func.func @transform_0(%arg0: i32) -> (i32, i32) {
    %c0_i32 = arith.constant 0 : i32
    %c0_i32_0 = arith.constant 0 : i32
    return %arg0, %c0_i32 : i32, i32
  }
  func.func @transform_1(%arg0: i32) -> (i32, i32) {
    %c0_i32 = arith.constant 0 : i32
    %c0_i32_0 = arith.constant 0 : i32
    %c0_i32_1 = arith.constant 0 : i32
    return %c0_i32, %c0_i32_0 : i32, i32
  }
  func.func @transform_2(%arg0: i32) -> (i32, i32) {
    %c0_i32 = arith.constant 0 : i32
    %c0_i32_0 = arith.constant 0 : i32
    %c0_i32_1 = arith.constant 0 : i32
    return %c0_i32, %c0_i32_0 : i32, i32
  }
  func.func @transform_3(%arg0: i32) -> (i32, i32) {
    %c0_i32 = arith.constant 0 : i32
    %c0_i32_0 = arith.constant 0 : i32
    return %arg0, %c0_i32 : i32, i32
  }
}

</mosaic_0001>

<bundles_post_ra>
// kernel: tpu_custom_call.1
= control target key start
LH: loop header
LB: loop body
LE: loop exit
PB: predicated region body
PF: predicated region fallthrough
CT: control target
= control target key end

     0   :  { %8 = vsyncpa [#allocation3], 0  ;;  %s198_s0 = inlined_call_operand.hbm [shape: f32[16,32], index: 0, kind: input, shape index: {}]   ;;  %s199_s1 = inlined_call_operand.vmem [shape: f32[1,32], index: 1, kind: input, shape index: {}]   ;;  %s200_s2 = inlined_call_operand.vmem [shape: f32[1,32], index: 2, kind: input, shape index: {}]   ;;  %s201_s3 = inlined_call_operand.hbm [shape: f32[16,32], index: 3, kind: output, shape index: {}]  }
   0x1   :  { %9 = vsyncpa [#allocation4], 0  ;;  %s150_s12 = smov [#allocation2]  }
   0x2   :  { %s15_s13 = sshll.u32 %s150_s12, 4  ;;  %s16_s13 = int_to_ptr.vmem [resolvable:$true] %s15_s13 }
   0x3   :  { %s114_s14 = scalar_lea.vmem %s16_s13, 256  ;;  %p119_p1 = scmp.lt.s32.totalorder %s16_s13, %s16_s13 }
   0x4   :  { %p115_p0 = scmp.ne.s32.totalorder %s16_s13, %s114_s14  ;;  %p120_p2 = scmp.lt.s32.totalorder %s114_s14, %s114_s14 }
   0x6   :  { %p121_p3 = por %p120_p2, %p119_p1 }
   0x8   :  { %p122_p4 = pnand %p121_p3, %p115_p0 }
   0xa   :  { %125 = shalt.err (!%p122_p4)
}
   0xb   :  { %s151_s15 = smov 128   ;;  %s152_s16 = smov 8  }
   0xc   :  { %21 = dma.hbm_to_vmem [thread:$0]  %s198_s0, 256, %s16_s13, [#allocation3], %s151_s15, %s151_s15, %s152_s16  }
   0xd   :  { %146 = dma.done.wait [#allocation3], 256  }
   0xe   :  { %147 = vsyncadd [#allocation3], 4294967040  ;;  %vm31_vm0 = vcmask 261120   ;;  %v29_v0 = vld [vmem:[#allocation2] sm:$0xff]  ;;  %v30_v1 = vld [vmem:[#allocation2 + $0x8] sm:$0xff]  ;;  %s153_s22 = smov [#allocation5]  }
   0xf   :  { %v32_v2 = vsel %vm31_vm0, %v29_v0, 0.0  ;;  %v35_v3 = vsel %vm31_vm0, %v30_v1, 0.0  ;;  %v96_v21 = vld [vmem:[%s199_s1] ss:$0 sm:$0xff]  ;;  %s84_s23 = sshll.u32 %s153_s22, 4  ;;  %s85_s23 = int_to_ptr.vmem [resolvable:$true] %s84_s23 }
  0x10   :  { %33 = vadd.xlane.f32.xlu0 %v32_v2  ;;  %v97_v23 = vld [vmem:[%s200_s2] ss:$0 sm:$0xff]  ;;  %s126_s24 = scalar_lea.vmem %s85_s23, 256  ;;  %p131_p6 = scmp.lt.s32.totalorder %s85_s23, %s85_s23 }
  0x11   :  { %p127_p5 = scmp.ne.s32.totalorder %s85_s23, %s126_s24  ;;  %p132_p7 = scmp.lt.s32.totalorder %s126_s24, %s126_s24 }
  0x13   :  { %p133_p8 = por %p132_p7, %p131_p6 }
  0x14   :  { %36 = vadd.xlane.f32.xlu0 %v35_v3 }
  0x15   :  { %p134_p9 = pnand %p133_p8, %p127_p5 }
  0x99   :  { %v34_v4 = vpop.xlane.xlu0 %33 }
  0x9a   :  { %v39_v5 = vmul.f32 0.03125, %v34_v4 }
  0x9c   :  { %v41_v6 = vsub.f32 %v29_v0, %v39_v5 }
  0x9d   :  { %v37_v7 = vpop.xlane.xlu0 %36 }
  0x9e   :  { %v40_v8 = vmul.f32 0.03125, %v37_v7  ;;  %v43_v9 = vmul.f32 %v41_v6, %v41_v6 }
  0xa0   :  { %v42_v10 = vsub.f32 %v30_v1, %v40_v8  ;;  %v45_v11 = vsel %vm31_vm0, %v43_v9, 0.0 }
  0xa1   :  { %46 = vadd.xlane.f32.xlu1 %v45_v11 }
  0xa2   :  { %v44_v12 = vmul.f32 %v42_v10, %v42_v10 }
  0xa4   :  { %v48_v13 = vsel %vm31_vm0, %v44_v12, 0.0 }
  0xa5   :  { %49 = vadd.xlane.f32.xlu1 %v48_v13 }
 0x12a   :  { %v47_v14 = vpop.xlane.xlu1 %46 }
 0x12b   :  { %v51_v15 = vmul.f32 0.03125, %v47_v14 }
 0x12d   :  { %v53_v16 = vadd.f32 1e-12, %v51_v15 }
 0x12e   :  { %v50_v17 = vpop.xlane.xlu1 %49 }
 0x12f   :  { %102 = vrsqrt.f32 %v53_v16  ;;  %v52_v18 = vmul.f32 0.03125, %v50_v17 }
 0x131   :  { %v54_v19 = vadd.f32 1e-12, %v52_v18 }
 0x133   :  { %104 = vrsqrt.f32 %v54_v19 }
 0x13c   :  { %v103_v20 = vpop.eup %102 }
 0x13d   :  { %v57_v22 = vmul.f32 %v103_v20, %v41_v6 }
 0x13f   :  { %v67_v24 = vmul.f32 %v96_v21, %v57_v22 }
 0x140   :  { %v105_v25 = vpop.eup %104 }
 0x141   :  { %v58_v26 = vmul.f32 %v105_v25, %v42_v10  ;;  %v75_v27 = vadd.f32 %v97_v23, %v67_v24 }
 0x143   :  { %v68_v28 = vmul.f32 %v96_v21, %v58_v26  ;;  %77 = vst.msk [vmem:[#allocation5] sm:$0xff] %vm31_vm0, %v75_v27 }
 0x145   :  { %v76_v29 = vadd.f32 %v97_v23, %v68_v28 }
 0x147   :  { %78 = vst.msk [vmem:[#allocation5 + $0x8] sm:$0xff] %vm31_vm0, %v76_v29 }
 0x148   :  { %137 = shalt.err (!%p134_p9)
}
 0x149   :  { %90 = dma.vmem_to_hbm [thread:$0]  %s85_s23, 256, %s201_s3, [#allocation4], %s151_s15, %s151_s15, %s152_s16  }
 0x14a   :  { %148 = dma.done.wait [#allocation4], 256  }
 0x14b   :  { %149 = vsyncadd [#allocation4], 4294967040 }
 0x14c   :  { %94 = vsyncpa [#allocation3], 1 }
 0x14d   :  { %95 = vsyncpa [#allocation4], 1 }

</bundles_post_ra>
